<compile_context>
chip_gen: v6e
topology: v6e:2x2x1
jax: 0.10.0
libtpu: 0.0.40
codegen_flags: <defaults>
</compile_context>

<pallas_src>
from functools import partial

import jax
import jax.numpy as jnp
from jax.experimental import pallas as pl
from jax.experimental.pallas import tpu as pltpu


def _round_up(x: int, m: int) -> int:
    return ((x + m - 1) // m) * m


def _mlp_fused_kernel(*refs, num_layers: int):
    # refs = (x_ref, w0, b0, w1, b1, ..., w_{L-1}, b_{L-1}, o_ref)
    x_ref = refs[0]
    o_ref = refs[-1]
    wb = refs[1:-1]

    h = x_ref[...]
    for i in range(num_layers):
        w = wb[2 * i][...]          # (K_pad, N_pad), compute dtype (f32 or bf16)
        b = wb[2 * i + 1][...]      # (1, N_pad), f32
        y = jnp.dot(h.astype(w.dtype), w, preferred_element_type=jnp.float32)
        y = y + b                   # bias once per layer, f32 epilogue
        if i < num_layers - 1:
            y = jnp.maximum(y, 0.0)
        h = y
    o_ref[...] = h.astype(o_ref.dtype)


def mlp_forward_pallas(x, params, *, compute_dtype=None, lane=128, max_tile_m=256):
    """Fused MLP forward. x: (..., input_dim); params: list of (W[in,out], b[out])."""
    orig_shape = x.shape
    in_dim = orig_shape[-1]
    out_dim = params[-1][0].shape[1]
    num_layers = len(params)
    cdt = jnp.dtype(x.dtype if compute_dtype is None else compute_dtype)

    rows = x.reshape(-1, in_dim)
    M = rows.shape[0]

    # --- choose row tile & pad M (f32 sublane = 8) ---
    M8 = _round_up(max(M, 1), 8)
    if M8 <= max_tile_m:
        tm, M_pad = M8, M8
    else:
        tm = max_tile_m
        M_pad = _round_up(M, tm)

    # --- pad every feature dim to a lane multiple (exact: zero padding) ---
    dims = [in_dim] + [w.shape[1] for (w, _) in params]
    dims_pad = [_round_up(d, lane) for d in dims]

    x_p = jnp.zeros((M_pad, dims_pad[0]), x.dtype).at[:M, :in_dim].set(rows)

    flat_inputs = [x_p]
    in_specs = [pl.BlockSpec((tm, dims_pad[0]), lambda i: (i, 0))]
    for li, (w, b) in enumerate(params):
        kp, np_ = dims_pad[li], dims_pad[li + 1]
        w_p = jnp.zeros((kp, np_), cdt).at[:w.shape[0], :w.shape[1]].set(w.astype(cdt))
        b_p = jnp.zeros((1, np_), jnp.float32).at[0, :b.shape[0]].set(b.astype(jnp.float32))
        flat_inputs += [w_p, b_p]
        # Weights/bias resident in VMEM: block index independent of the M grid axis.
        in_specs += [
            pl.BlockSpec((kp, np_), lambda i: (0, 0)),
            pl.BlockSpec((1, np_), lambda i: (0, 0)),
        ]

    n_out_pad = dims_pad[-1]
    grid = (M_pad // tm,)

    # Advisory cost estimate for XLA scheduling.
    flops = 2 * M_pad * sum(dims_pad[i] * dims_pad[i + 1] for i in range(num_layers))
    bytes_accessed = int(
        x_p.size * x_p.dtype.itemsize
        + sum(a.size * a.dtype.itemsize for a in flat_inputs[1:])
        + M_pad * n_out_pad * jnp.dtype(x.dtype).itemsize
    )
    cost = pl.CostEstimate(flops=flops, transcendentals=0, bytes_accessed=bytes_accessed)

    # VMEM budget: double-buffered x/out tiles + resident params + slack.
    # Capped at 48 MiB so it stays within v7x's 64 MiB physical VMEM per core.
    itm = jnp.dtype(x.dtype).itemsize
    vmem_needed = (
        2 * tm * (dims_pad[0] + n_out_pad) * itm
        + sum(a.size * a.dtype.itemsize for a in flat_inputs[1:])
        + (4 << 20)
    )
    vmem_limit = int(min(max(vmem_needed, 32 << 20), 48 << 20))

    y_pad = pl.pallas_call(
        partial(_mlp_fused_kernel, num_layers=num_layers),
        grid=grid,
        in_specs=in_specs,
        out_specs=pl.BlockSpec((tm, n_out_pad), lambda i: (i, 0)),
        out_shape=jax.ShapeDtypeStruct((M_pad, n_out_pad), x.dtype),
        compiler_params=pltpu.CompilerParams(
            dimension_semantics=("parallel",),
            vmem_limit_bytes=vmem_limit,
        ),
        cost_estimate=cost,
    )(*flat_inputs)

    y = y_pad[:M, :out_dim]
    return y.reshape(*orig_shape[:-1], out_dim)


def init_mlp_params(key, input_dim, hidden_dim, output_dim, num_layers, dtype=jnp.float32):
    """Deterministic synthetic params. PyTorch Linear weight is (out, in);
    we store the transpose (in, out) so the kernel does x @ W directly."""
    h = [hidden_dim] * (num_layers - 1)
    dims_in = [input_dim] + h
    dims_out = h + [output_dim]
    params = []
    for n, k in zip(dims_in, dims_out):
        key, kw, kb = jax.random.split(key, 3)
        bound = 1.0 / (n ** 0.5)  # matches nn.Linear's uniform init range
        w = jax.random.uniform(kw, (n, k), dtype=dtype, minval=-bound, maxval=bound)
        b = jax.random.uniform(kb, (k,), dtype=dtype, minval=-bound, maxval=bound)
        params.append((w, b))
    return params


def mlp_reference(x, params):
    num_layers = len(params)
    y = x
    for i, (w, b) in enumerate(params):
        y = jnp.dot(y, w) + b
        if i < num_layers - 1:
            y = jnp.maximum(y, 0.0)
    return y


if __name__ == "__main__":
    key = jax.random.PRNGKey(0)
    key_x, key_x2, key_p = jax.random.split(key, 3)

    # Small shapes consistent with an FFN/box head: (batch, queries, input_dim)
    batch, seq = 2, 8
    input_dim, hidden_dim, output_dim, num_layers = 32, 32, 4, 3

    x = jax.random.normal(key_x, (batch, seq, input_dim), dtype=jnp.float32)
    params = init_mlp_params(key_p, input_dim, hidden_dim, output_dim, num_layers)
    ref = mlp_reference(x, params)

    fwd = jax.jit(mlp_forward_pallas)

    # f32 path (exact vs reference).
    out = jax.block_until_ready(fwd(x, params))
    assert out.shape == (batch, seq, output_dim), out.shape
    assert jnp.allclose(out, ref, atol=1e-5, rtol=1e-5), "f32 mismatch vs reference"

    # Rows not a multiple of 8 -> exercises the row-padding path.
    x2 = jax.random.normal(key_x2, (3, 5, input_dim), dtype=jnp.float32)
    out2 = jax.block_until_ready(fwd(x2, params))
    ref2 = mlp_reference(x2, params)
    assert out2.shape == (3, 5, output_dim), out2.shape
    assert jnp.allclose(out2, ref2, atol=1e-5, rtol=1e-5), "padded-M mismatch vs reference"

    # bf16 matmul operands (v6e/v7x MXU path), f32 accumulate/bias/ReLU.
    fwd_bf16 = jax.jit(partial(mlp_forward_pallas, compute_dtype=jnp.bfloat16))
    out_bf16 = jax.block_until_ready(fwd_bf16(x, params))
    assert out_bf16.shape == (batch, seq, output_dim), out_bf16.shape
    assert jnp.allclose(out_bf16, ref, atol=1e-1, rtol=1e-1), "bf16 mismatch vs reference"

    print("KERNEL_OK")
</pallas_src>

<mosaic_0001>
module attributes {stable_mosaic.version = 11 : i64} {
  func.func @_mlp_fused_kernel(%arg0: i32, %arg1: memref<16x128xf32, #tpu.memory_space<vmem>>, %arg2: memref<128x128xf32, #tpu.memory_space<vmem>>, %arg3: memref<1x128xf32, #tpu.memory_space<vmem>>, %arg4: memref<128x128xf32, #tpu.memory_space<vmem>>, %arg5: memref<1x128xf32, #tpu.memory_space<vmem>>, %arg6: memref<128x128xf32, #tpu.memory_space<vmem>>, %arg7: memref<1x128xf32, #tpu.memory_space<vmem>>, %arg8: memref<16x128xf32, #tpu.memory_space<vmem>>) attributes {dimension_semantics = [#tpu.dimension_semantics<parallel>], iteration_bounds = array<i64: 1>, scalar_prefetch = 0 : i64, scratch_operands = 0 : i64, tpu.core_type = #tpu.core_type<tc>, window_params = [{transform_indices = @transform_0, window_bounds = array<i64: 16, 128>}, {pipeline_mode = #tpu.pipeline_mode<synchronous>, transform_indices = @transform_1, window_bounds = array<i64: 128, 128>}, {pipeline_mode = #tpu.pipeline_mode<synchronous>, transform_indices = @transform_2, window_bounds = array<i64: 1, 128>}, {pipeline_mode = #tpu.pipeline_mode<synchronous>, transform_indices = @transform_3, window_bounds = array<i64: 128, 128>}, {pipeline_mode = #tpu.pipeline_mode<synchronous>, transform_indices = @transform_4, window_bounds = array<i64: 1, 128>}, {pipeline_mode = #tpu.pipeline_mode<synchronous>, transform_indices = @transform_5, window_bounds = array<i64: 128, 128>}, {pipeline_mode = #tpu.pipeline_mode<synchronous>, transform_indices = @transform_6, window_bounds = array<i64: 1, 128>}, {transform_indices = @transform_7, window_bounds = array<i64: 16, 128>}]} {
    %c0 = arith.constant 0 : index
    %c0_0 = arith.constant 0 : index
    %0 = vector.load %arg1[%c0, %c0_0] : memref<16x128xf32, #tpu.memory_space<vmem>>, vector<16x128xf32>
    %c0_1 = arith.constant 0 : index
    %c0_2 = arith.constant 0 : index
    %1 = vector.load %arg2[%c0_1, %c0_2] : memref<128x128xf32, #tpu.memory_space<vmem>>, vector<128x128xf32>
    %c0_3 = arith.constant 0 : index
    %c0_4 = arith.constant 0 : index
    %2 = vector.load %arg3[%c0_3, %c0_4] : memref<1x128xf32, #tpu.memory_space<vmem>>, vector<1x128xf32>
    %cst = arith.constant dense<0.000000e+00> : vector<16x128xf32>
    %3 = tpu.matmul %0, %1, %cst {dimension_numbers = #tpu.dot_dimension_numbers<[1], [0], [0], [1], [0, 0, 1, 1], [], []>} : vector<16x128xf32>, vector<128x128xf32>, vector<16x128xf32> -> vector<16x128xf32>
    %4 = vector.broadcast %2 : vector<1x128xf32> to vector<16x128xf32>
    %5 = arith.addf %3, %4 : vector<16x128xf32>
    %cst_5 = arith.constant 0.000000e+00 : f32
    %6 = vector.broadcast %cst_5 : f32 to vector<16x128xf32>
    %7 = arith.maximumf %5, %6 : vector<16x128xf32>
    %c0_6 = arith.constant 0 : index
    %c0_7 = arith.constant 0 : index
    %8 = vector.load %arg4[%c0_6, %c0_7] : memref<128x128xf32, #tpu.memory_space<vmem>>, vector<128x128xf32>
    %c0_8 = arith.constant 0 : index
    %c0_9 = arith.constant 0 : index
    %9 = vector.load %arg5[%c0_8, %c0_9] : memref<1x128xf32, #tpu.memory_space<vmem>>, vector<1x128xf32>
    %cst_10 = arith.constant dense<0.000000e+00> : vector<16x128xf32>
    %10 = tpu.matmul %7, %8, %cst_10 {dimension_numbers = #tpu.dot_dimension_numbers<[1], [0], [0], [1], [0, 0, 1, 1], [], []>} : vector<16x128xf32>, vector<128x128xf32>, vector<16x128xf32> -> vector<16x128xf32>
    %11 = vector.broadcast %9 : vector<1x128xf32> to vector<16x128xf32>
    %12 = arith.addf %10, %11 : vector<16x128xf32>
    %cst_11 = arith.constant 0.000000e+00 : f32
    %13 = vector.broadcast %cst_11 : f32 to vector<16x128xf32>
    %14 = arith.maximumf %12, %13 : vector<16x128xf32>
    %c0_12 = arith.constant 0 : index
    %c0_13 = arith.constant 0 : index
    %15 = vector.load %arg6[%c0_12, %c0_13] : memref<128x128xf32, #tpu.memory_space<vmem>>, vector<128x128xf32>
    %c0_14 = arith.constant 0 : index
    %c0_15 = arith.constant 0 : index
    %16 = vector.load %arg7[%c0_14, %c0_15] : memref<1x128xf32, #tpu.memory_space<vmem>>, vector<1x128xf32>
    %cst_16 = arith.constant dense<0.000000e+00> : vector<16x128xf32>
    %17 = tpu.matmul %14, %15, %cst_16 {dimension_numbers = #tpu.dot_dimension_numbers<[1], [0], [0], [1], [0, 0, 1, 1], [], []>} : vector<16x128xf32>, vector<128x128xf32>, vector<16x128xf32> -> vector<16x128xf32>
    %18 = vector.broadcast %16 : vector<1x128xf32> to vector<16x128xf32>
    %19 = arith.addf %17, %18 : vector<16x128xf32>
    %c0_17 = arith.constant 0 : index
    %c0_18 = arith.constant 0 : index
    %20 = vector.load %arg8[%c0_17, %c0_18] : memref<16x128xf32, #tpu.memory_space<vmem>>, vector<16x128xf32>
    tpu.vector_store %arg8[%c0_17, %c0_18], %19 {strides = array<i32>} : memref<16x128xf32, #tpu.memory_space<vmem>>, vector<16x128xf32>,
    return
  }
  func.func @transform_0(%arg0: i32) -> (i32, i32) {
    %c0_i32 = arith.constant 0 : i32
    %c0_i32_0 = arith.constant 0 : i32
    return %arg0, %c0_i32 : i32, i32
  }
  func.func @transform_1(%arg0: i32) -> (i32, i32) {
    %c0_i32 = arith.constant 0 : i32
    %c0_i32_0 = arith.constant 0 : i32
    %c0_i32_1 = arith.constant 0 : i32
    return %c0_i32, %c0_i32_0 : i32, i32
  }
  func.func @transform_2(%arg0: i32) -> (i32, i32) {
    %c0_i32 = arith.constant 0 : i32
    %c0_i32_0 = arith.constant 0 : i32
    %c0_i32_1 = arith.constant 0 : i32
    return %c0_i32, %c0_i32_0 : i32, i32
  }
  func.func @transform_3(%arg0: i32) -> (i32, i32) {
    %c0_i32 = arith.constant 0 : i32
    %c0_i32_0 = arith.constant 0 : i32
    %c0_i32_1 = arith.constant 0 : i32
    return %c0_i32, %c0_i32_0 : i32, i32
  }
  func.func @transform_4(%arg0: i32) -> (i32, i32) {
    %c0_i32 = arith.constant 0 : i32
    %c0_i32_0 = arith.constant 0 : i32
    %c0_i32_1 = arith.constant 0 : i32
    return %c0_i32, %c0_i32_0 : i32, i32
  }
  func.func @transform_5(%arg0: i32) -> (i32, i32) {
    %c0_i32 = arith.constant 0 : i32
    %c0_i32_0 = arith.constant 0 : i32
    %c0_i32_1 = arith.constant 0 : i32
    return %c0_i32, %c0_i32_0 : i32, i32
  }
  func.func @transform_6(%arg0: i32) -> (i32, i32) {
    %c0_i32 = arith.constant 0 : i32
    %c0_i32_0 = arith.constant 0 : i32
    %c0_i32_1 = arith.constant 0 : i32
    return %c0_i32, %c0_i32_0 : i32, i32
  }
  func.func @transform_7(%arg0: i32) -> (i32, i32) {
    %c0_i32 = arith.constant 0 : i32
    %c0_i32_0 = arith.constant 0 : i32
    return %arg0, %c0_i32 : i32, i32
  }
}

</mosaic_0001>

<bundles_post_ra>
// kernel: mlp_forward_pallas.1
= control target key start
LH: loop header
LB: loop body
LE: loop exit
PB: predicated region body
PF: predicated region fallthrough
CT: control target
= control target key end

     0   :  { %s699_s1 = inlined_call_operand.vmem [shape: f32[128,128], index: 1, kind: input, shape index: {}]   ;;  %s700_s0 = inlined_call_operand.vmem [shape: f32[16,128], index: 0, kind: input, shape index: {}]   ;;  %s701_s3 = inlined_call_operand.vmem [shape: f32[128,128], index: 3, kind: input, shape index: {}]   ;;  %s702_s5 = inlined_call_operand.vmem [shape: f32[128,128], index: 5, kind: input, shape index: {}]   ;;  %s703_s2 = inlined_call_operand.vmem [shape: f32[1,128], index: 2, kind: input, shape index: {}]   ;;  %s704_s4 = inlined_call_operand.vmem [shape: f32[1,128], index: 4, kind: input, shape index: {}]   ;;  %s705_s6 = inlined_call_operand.vmem [shape: f32[1,128], index: 6, kind: input, shape index: {}]   ;;  %s706_s7 = inlined_call_operand.vmem [shape: f32[16,128], index: 7, kind: output, shape index: {}]  }
   0x1   :  { %v43_v0 = vld [vmem:[%s699_s1 + $0x78] sm:$0xff]  ;;  %v42_v1 = vld [vmem:[%s699_s1 + $0x70] sm:$0xff]  ;;  %v41_v2 = vld [vmem:[%s699_s1 + $0x68] sm:$0xff] }
   0x2   :  { %389 = vmatprep.subr.mxu0 %v43_v0  ;;  %v40_v3 = vld [vmem:[%s699_s1 + $0x60] sm:$0xff]  ;;  %v39_v5 = vld [vmem:[%s699_s1 + $0x58] sm:$0xff]  ;;  %v142_v7 = vld [vmem:[%s701_s3 + $0x70] sm:$0xff] }
   0x3   :  { %390 = vmatpush3.msra.mxu0 %v43_v0  ;;  %v26_v4 = vld [vmem:[%s700_s0] sm:$0xff]  ;;  %v143_v6 = vld [vmem:[%s701_s3 + $0x78] sm:$0xff]  ;;  %v38_v8 = vld [vmem:[%s699_s1 + $0x50] sm:$0xff] }
   0x4   :  { %391 = vmatprep.subr.mxu0 %v42_v1  ;;  %421 = vmatprep.mubr.f32.mxu0 %v26_v4  ;;  %v141_v9 = vld [vmem:[%s701_s3 + $0x68] sm:$0xff]  ;;  %v140_v11 = vld [vmem:[%s701_s3 + $0x60] sm:$0xff]  ;;  %v139_v13 = vld [vmem:[%s701_s3 + $0x58] sm:$0xff] }
   0x5   :  { %392 = vmatpush3.msra.mxu0 %v42_v1  ;;  %424 = vmatprep.subr.mxu1 %v143_v6  ;;  %v37_v10 = vld [vmem:[%s699_s1 + $0x48] sm:$0xff]  ;;  %v36_v12 = vld [vmem:[%s699_s1 + $0x40] sm:$0xff]  ;;  %v35_v14 = vld [vmem:[%s699_s1 + $0x38] sm:$0xff] }
   0x6   :  { %393 = vmatprep.subr.mxu0 %v41_v2  ;;  %425 = vmatpush3.msra.mxu1 %v143_v6  ;;  %v138_v15 = vld [vmem:[%s701_s3 + $0x50] sm:$0xff]  ;;  %v137_v17 = vld [vmem:[%s701_s3 + $0x48] sm:$0xff]  ;;  %v136_v19 = vld [vmem:[%s701_s3 + $0x40] sm:$0xff] }
   0x7   :  { %394 = vmatpush3.msra.mxu0 %v41_v2  ;;  %426 = vmatprep.subr.mxu1 %v142_v7  ;;  %v34_v16 = vld [vmem:[%s699_s1 + $0x30] sm:$0xff]  ;;  %v33_v18 = vld [vmem:[%s699_s1 + $0x28] sm:$0xff]  ;;  %v32_v20 = vld [vmem:[%s699_s1 + $0x20] sm:$0xff] }
   0x8   :  { %395 = vmatprep.subr.mxu0 %v40_v3  ;;  %427 = vmatpush3.msra.mxu1 %v142_v7  ;;  %v135_v21 = vld [vmem:[%s701_s3 + $0x38] sm:$0xff]  ;;  %v134_v23 = vld [vmem:[%s701_s3 + $0x30] sm:$0xff]  ;;  %v133_v25 = vld [vmem:[%s701_s3 + $0x28] sm:$0xff] }
   0x9   :  { %396 = vmatpush3.msra.mxu0 %v40_v3  ;;  %428 = vmatprep.subr.mxu1 %v141_v9  ;;  %v31_v22 = vld [vmem:[%s699_s1 + $0x18] sm:$0xff]  ;;  %v30_v24 = vld [vmem:[%s699_s1 + $0x10] sm:$0xff]  ;;  %v29_v26 = vld [vmem:[%s699_s1 + $0x8] sm:$0xff] }
   0xa   :  { %397 = vmatprep.subr.mxu0 %v39_v5  ;;  %429 = vmatpush3.msra.mxu1 %v141_v9  ;;  %v132_v27 = vld [vmem:[%s701_s3 + $0x20] sm:$0xff]  ;;  %v27_v29 = vld [vmem:[%s700_s0 + $0x8] sm:$0xff]  ;;  %v131_v30 = vld [vmem:[%s701_s3 + $0x18] sm:$0xff] }
   0xb   :  { %398 = vmatpush3.msra.mxu0 %v39_v5  ;;  %430 = vmatprep.subr.mxu1 %v140_v11  ;;  %v28_v28 = vld [vmem:[%s699_s1] sm:$0xff]  ;;  %v130_v31 = vld [vmem:[%s701_s3 + $0x10] sm:$0xff]  ;;  %v129_v32 = vld [vmem:[%s701_s3 + $0x8] sm:$0xff] }
   0xc   :  { %399 = vmatprep.subr.mxu0 %v38_v8  ;;  %431 = vmatpush3.msra.mxu1 %v140_v11  ;;  %v128_v33 = vld [vmem:[%s701_s3] sm:$0xff]  ;;  %v243_v34 = vld [vmem:[%s702_s5 + $0x78] sm:$0xff]  ;;  %v242_v35 = vld [vmem:[%s702_s5 + $0x70] sm:$0xff] }
   0xd   :  { %400 = vmatpush3.msra.mxu0 %v38_v8  ;;  %432 = vmatprep.subr.mxu1 %v139_v13  ;;  %v241_v36 = vld [vmem:[%s702_s5 + $0x68] sm:$0xff]  ;;  %v240_v37 = vld [vmem:[%s702_s5 + $0x60] sm:$0xff]  ;;  %v239_v38 = vld [vmem:[%s702_s5 + $0x58] sm:$0xff] }
   0xe   :  { %401 = vmatprep.subr.mxu0 %v37_v10  ;;  %433 = vmatpush3.msra.mxu1 %v139_v13  ;;  %v238_v39 = vld [vmem:[%s702_s5 + $0x50] sm:$0xff]  ;;  %v237_v40 = vld [vmem:[%s702_s5 + $0x48] sm:$0xff]  ;;  %v236_v41 = vld [vmem:[%s702_s5 + $0x40] sm:$0xff] }
   0xf   :  { %402 = vmatpush3.msra.mxu0 %v37_v10  ;;  %434 = vmatprep.subr.mxu1 %v138_v15  ;;  %v235_v42 = vld [vmem:[%s702_s5 + $0x38] sm:$0xff]  ;;  %v234_v43 = vld [vmem:[%s702_s5 + $0x30] sm:$0xff]  ;;  %v233_v44 = vld [vmem:[%s702_s5 + $0x28] sm:$0xff] }
  0x10   :  { %403 = vmatprep.subr.mxu0 %v36_v12  ;;  %435 = vmatpush3.msra.mxu1 %v138_v15  ;;  %v232_v45 = vld [vmem:[%s702_s5 + $0x20] sm:$0xff]  ;;  %v231_v53 = vld [vmem:[%s702_s5 + $0x18] sm:$0xff]  ;;  %v230_v54 = vld [vmem:[%s702_s5 + $0x10] sm:$0xff] }
  0x11   :  { %404 = vmatpush3.msra.mxu0 %v36_v12  ;;  %436 = vmatprep.subr.mxu1 %v137_v17  ;;  %v332_v46 = vld [vmem:[%s703_s2] ss:$0 sm:$0xff]  ;;  %v229_v55 = vld [vmem:[%s702_s5 + $0x8] sm:$0xff] }
  0x12   :  { %405 = vmatprep.subr.mxu0 %v35_v14  ;;  %437 = vmatpush3.msra.mxu1 %v137_v17  ;;  %v228_v56 = vld [vmem:[%s702_s5] sm:$0xff] }
  0x13   :  { %406 = vmatpush3.msra.mxu0 %v35_v14  ;;  %438 = vmatprep.subr.mxu1 %v136_v19  ;;  %v333_v57 = vld [vmem:[%s704_s4] ss:$0 sm:$0xff] }
  0x14   :  { %407 = vmatprep.subr.mxu0 %v34_v16  ;;  %439 = vmatpush3.msra.mxu1 %v136_v19  ;;  %v334_v0 = vld [vmem:[%s705_s6] ss:$0 sm:$0xff] }
  0x15   :  { %408 = vmatpush3.msra.mxu0 %v34_v16  ;;  %440 = vmatprep.subr.mxu1 %v135_v21 }
  0x16   :  { %409 = vmatprep.subr.mxu0 %v33_v18  ;;  %441 = vmatpush3.msra.mxu1 %v135_v21 }
  0x17   :  { %410 = vmatpush3.msra.mxu0 %v33_v18  ;;  %442 = vmatprep.subr.mxu1 %v134_v23 }
  0x18   :  { %411 = vmatprep.subr.mxu0 %v32_v20  ;;  %443 = vmatpush3.msra.mxu1 %v134_v23 }
  0x19   :  { %412 = vmatpush3.msra.mxu0 %v32_v20  ;;  %444 = vmatprep.subr.mxu1 %v133_v25 }
  0x1a   :  { %413 = vmatprep.subr.mxu0 %v31_v22  ;;  %445 = vmatpush3.msra.mxu1 %v133_v25 }
  0x1b   :  { %414 = vmatpush3.msra.mxu0 %v31_v22  ;;  %446 = vmatprep.subr.mxu1 %v132_v27 }
  0x1c   :  { %415 = vmatprep.subr.mxu0 %v30_v24  ;;  %447 = vmatpush3.msra.mxu1 %v132_v27 }
  0x1d   :  { %416 = vmatpush3.msra.mxu0 %v30_v24  ;;  %448 = vmatprep.subr.mxu1 %v131_v30 }
  0x1e   :  { %417 = vmatprep.subr.mxu0 %v29_v26  ;;  %449 = vmatpush3.msra.mxu1 %v131_v30 }
  0x1f   :  { %418 = vmatpush3.msra.mxu0 %v29_v26  ;;  %450 = vmatprep.subr.mxu1 %v130_v31 }
  0x20   :  { %419 = vmatprep.subr.mxu0 %v28_v28  ;;  %451 = vmatpush3.msra.mxu1 %v130_v31 }
  0x21   :  { %420 = vmatpush3.msra.mxu0 %v28_v28  ;;  %452 = vmatprep.subr.mxu1 %v129_v32 }
  0x22   :  { %422 = vmatmul.mubr.f32.vlgmr.msra.gmra.mxu0 %v27_v29  ;;  %453 = vmatpush3.msra.mxu1 %v129_v32 }
  0x23   :  { %454 = vmatprep.subr.mxu1 %v128_v33  ;;  %459 = vmatprep.subr.mxu0 %v243_v34 }
  0x24   :  { %455 = vmatpush3.msra.mxu1 %v128_v33  ;;  %460 = vmatpush3.msra.mxu0 %v243_v34 }
  0x25   :  { %461 = vmatprep.subr.mxu0 %v242_v35 }
  0x26   :  { %462 = vmatpush3.msra.mxu0 %v242_v35 }
  0x27   :  { %463 = vmatprep.subr.mxu0 %v241_v36 }
  0x28   :  { %464 = vmatpush3.msra.mxu0 %v241_v36 }
  0x29   :  { %465 = vmatprep.subr.mxu0 %v240_v37 }
  0x2a   :  { %466 = vmatpush3.msra.mxu0 %v240_v37 }
  0x2b   :  { %467 = vmatprep.subr.mxu0 %v239_v38 }
  0x2c   :  { %468 = vmatpush3.msra.mxu0 %v239_v38 }
  0x2d   :  { %469 = vmatprep.subr.mxu0 %v238_v39 }
  0x2e   :  { %470 = vmatpush3.msra.mxu0 %v238_v39 }
  0x2f   :  { %471 = vmatprep.subr.mxu0 %v237_v40 }
  0x30   :  { %472 = vmatpush3.msra.mxu0 %v237_v40 }
  0x31   :  { %473 = vmatprep.subr.mxu0 %v236_v41 }
  0x32   :  { %474 = vmatpush3.msra.mxu0 %v236_v41 }
  0x33   :  { %475 = vmatprep.subr.mxu0 %v235_v42 }
  0x34   :  { %476 = vmatpush3.msra.mxu0 %v235_v42 }
  0x35   :  { %477 = vmatprep.subr.mxu0 %v234_v43 }
  0x36   :  { %478 = vmatpush3.msra.mxu0 %v234_v43 }
  0x37   :  { %479 = vmatprep.subr.mxu0 %v233_v44 }
  0x38   :  { %480 = vmatpush3.msra.mxu0 %v233_v44 }
  0x39   :  { %481 = vmatprep.subr.mxu0 %v232_v45 }
  0x3a   :  { %482 = vmatpush3.msra.mxu0 %v232_v45 }
  0x3b   :  { %483 = vmatprep.subr.mxu0 %v231_v53 }
  0x3c   :  { %484 = vmatpush3.msra.mxu0 %v231_v53 }
  0x3d   :  { %485 = vmatprep.subr.mxu0 %v230_v54 }
  0x3e   :  { %486 = vmatpush3.msra.mxu0 %v230_v54 }
  0x3f   :  { %487 = vmatprep.subr.mxu0 %v229_v55 }
  0x40   :  { %488 = vmatpush3.msra.mxu0 %v229_v55 }
  0x41   :  { %489 = vmatprep.subr.mxu0 %v228_v56 }
  0x42   :  { %490 = vmatpush3.msra.mxu0 %v228_v56 }
  0xe2   :  { %v423_v47 = vpop.f32.mrf.mxu0 }
  0xe3   :  { %v123_v48 = vadd.f32 %v423_v47, %v332_v46 }
  0xe4   :  { %v117_v49 = vpop.f32.mrf.mxu0 }
  0xe5   :  { %v118_v50 = vadd.f32 %v332_v46, %v117_v49  ;;  %v127_v52 = vmax.f32 %v123_v48, 0.0 }
  0xe7   :  { %v126_v51 = vmax.f32 %v118_v50, 0.0 }
  0xe9   :  { %456 = vmatprep.mubr.f32.mxu1 %v126_v51 }
  0xea   :  { %457 = vmatmul.mubr.f32.vlgmr.msra.gmra.mxu1 %v127_v52 }
 0x1aa   :  { %v458_v58 = vpop.f32.mrf.mxu1 }
 0x1ab   :  { %v223_v59 = vadd.f32 %v458_v58, %v333_v57 }
 0x1ac   :  { %v217_v60 = vpop.f32.mrf.mxu1 }
 0x1ad   :  { %v218_v61 = vadd.f32 %v333_v57, %v217_v60  ;;  %v227_v63 = vmax.f32 %v223_v59, 0.0 }
 0x1af   :  { %v226_v62 = vmax.f32 %v218_v61, 0.0 }
 0x1b1   :  { %491 = vmatprep.mubr.f32.mxu0 %v226_v62 }
 0x1b2   :  { %492 = vmatmul.mubr.f32.vlgmr.msra.gmra.mxu0 %v227_v63 }
 0x272   :  { %v493_v1 = vpop.f32.mrf.mxu0 }
 0x273   :  { %v323_v2 = vadd.f32 %v493_v1, %v334_v0 }
 0x274   :  { %v317_v3 = vpop.f32.mrf.mxu0 }
 0x275   :  { %327 = vst [vmem:[%s706_s7 + $0x8] sm:$0xff] %v323_v2  ;;  %v318_v4 = vadd.f32 %v334_v0, %v317_v3 }
 0x277   :  { %326 = vst [vmem:[%s706_s7] sm:$0xff] %v318_v4 }

</bundles_post_ra>
